<compile_context>
chip_gen: v7x
topology: tpu7x:2x2x1
jax: 0.10.0
libtpu: 0.0.40
codegen_flags: <defaults>
</compile_context>

<pallas_src>
import functools

import numpy as np
import jax
import jax.numpy as jnp
from jax.experimental import pallas as pl
from jax.experimental.pallas import tpu as pltpu


def _round_up(v, m):
    return -(-v // m) * m


# ----------------------------------------------------------------------------
# Fused Pallas kernels (one grid step == one block of B images)
# ----------------------------------------------------------------------------
def bottleneck_s1_kernel(x_ref, w1_ref, w2_ref, b2_ref, w3_ref, b3_ref, o_ref,
                         *, W, n_lanes):
    """stride==1: relu(bn3(conv3(dw3x3(shuffle(relu(bn1(conv1(x))))))) + x).

    Layout: [Cin+1, B*Simg] f32, guard-column rows (stride W+1), per-image
    slabs 128-aligned, last input row = valid-lane indicator (carries bias).
    """
    Wg = W + 1
    xa = x_ref[...]                                           # [Cin+1, Lb] f32

    # stage 1: grouped 1x1 conv (+BN1 scale, +shuffle, +bias folded into w1)
    # + ReLU.  bf16 MXU operands, f32 accumulation.  Padding/guard lanes of
    # h1 are exactly 0 because the bias rides on the valid-indicator row.
    h1 = jnp.maximum(
        jnp.dot(w1_ref[...], xa.astype(jnp.bfloat16),
                preferred_element_type=jnp.float32), 0.0)     # [midp, Lb]

    # stage 2: 3x3 depthwise conv (+BN2) as 9 XLU lane-rotations of h1.
    w2 = w2_ref[...]                                          # [midp, 9]
    acc = None
    taps = [(di, dj) for di in (-1, 0, 1) for dj in (-1, 0, 1)]
    for t, (di, dj) in enumerate(taps):
        s = di * Wg + dj
        tap = h1 if s == 0 else pltpu.roll(h1, (-s) % n_lanes, axis=1)
        term = w2[:, t:t + 1] * tap
        acc = term if acc is None else acc + term
    h2 = jnp.maximum(acc + b2_ref[...], 0.0)                  # [midp, Lb]

    # stage 3: grouped 1x1 conv (+BN3) fused with residual add + final ReLU.
    y = jnp.dot(w3_ref[...], h2.astype(jnp.bfloat16),
                preferred_element_type=jnp.float32) + b3_ref[...]
    o_ref[...] = jnp.maximum(y + xa[:o_ref.shape[0], :], 0.0)


def bottleneck_s2_kernel(x_ref, w1_ref, w2_ref, b2_ref, w3_ref, b3_ref, o_ref,
                         *, c_out, Wo, phase_lanes):
    """stride==2: relu(cat([bn3(conv3(dw3x3_s2(...))), avgpool3x3_s2(x)])).

    Layout: [Cin+1, 4*B*Sph] f32, phase-major lanes (ee|eo|oe|oo), each
    per-image phase slab = 128 lanes with guard columns (row stride Wo+1).
    """
    Wog = Wo + 1
    n = phase_lanes                                           # B * Sph
    c_in = x_ref.shape[0] - 1
    xa = x_ref[...]                                           # [Cin+1, 4n]

    # stage 1: ONE fused grouped-1x1 conv over all 4 phases (+BN1 +shuffle
    # +bias folded) + ReLU.  Padding/guard lanes stay exactly 0.
    h1 = jnp.maximum(
        jnp.dot(w1_ref[...], xa.astype(jnp.bfloat16),
                preferred_element_type=jnp.float32), 0.0)     # [midp, 4n]
    h_ee, h_eo, h_oe, h_oo = (h1[:, i * n:(i + 1) * n] for i in range(4))
    x_ee, x_eo, x_oe, x_oo = (xa[:c_in, i * n:(i + 1) * n] for i in range(4))

    def rot(a, k):                                            # XLU lane roll
        return pltpu.roll(a, k, axis=1) if k else a

    # stage 2: 3x3 / stride-2 / pad-1 depthwise conv evaluated only at the
    # Ho*Wo output positions; w2[:, 3*(di+1)+(dj+1)] is the (di, dj) tap.
    w2 = w2_ref[...]
    acc = (w2[:, 4:5] * h_ee
           + w2[:, 5:6] * h_eo + w2[:, 3:4] * rot(h_eo, 1)
           + w2[:, 7:8] * h_oe + w2[:, 1:2] * rot(h_oe, Wog)
           + w2[:, 8:9] * h_oo + w2[:, 6:7] * rot(h_oo, 1)
           + w2[:, 2:3] * rot(h_oo, Wog) + w2[:, 0:1] * rot(h_oo, Wog + 1))
    h2 = jnp.maximum(acc + b2_ref[...], 0.0)                  # [midp, n]

    # stage 3: grouped 1x1 conv + BN3.
    y = jnp.dot(w3_ref[...], h2.astype(jnp.bfloat16),
                preferred_element_type=jnp.float32) + b3_ref[...]

    # shortcut: AvgPool2d(3, stride=2, pad=1) = plain 9-tap sum * (1/9).
    pool = (x_ee
            + x_eo + rot(x_eo, 1)
            + x_oe + rot(x_oe, Wog)
            + x_oo + rot(x_oo, 1) + rot(x_oo, Wog) + rot(x_oo, Wog + 1))

    o_ref[:c_out, :] = jnp.maximum(y, 0.0)
    o_ref[c_out:, :] = jnp.maximum(pool, 0.0) * (1.0 / 9.0)


# ----------------------------------------------------------------------------
# pallas_call wrapper
# ----------------------------------------------------------------------------
def _const_spec(shape):
    nd = len(shape)
    return pl.BlockSpec(shape, lambda g, _nd=nd: (0,) * _nd)


def _choose_batch_block(N):
    # >= 2 grid steps when N >= 2 (keeps both v7x TensorCores busy), <= 8
    # images per step (per-step VMEM stays far below every chip's limit).
    return max(1, min(8, -(-N // 2)))


def bottleneck_forward(x, prep, *, stride, c_out):
    """Fused Pallas implementation of Bottleneck.forward. x: [N, C_in, H, W]."""
    N, Cin, H, W = x.shape
    midp = prep["w1"].shape[0]
    B = _choose_batch_block(N)
    G = -(-N // B)
    Npad = G * B
    if Npad != N:
        x = jnp.pad(x, ((0, Npad - N), (0, 0), (0, 0), (0, 0)))

    wspecs = [_const_spec((midp, Cin + 1)),
              _const_spec((midp, 9)), _const_spec((midp, 1)),
              _const_spec((c_out, midp)), _const_spec((c_out, 1))]
    wargs = (prep["w1"], prep["w2"], prep["b2"], prep["w3"], prep["b3"])
    cparams = pltpu.CompilerParams(dimension_semantics=("parallel",))

    if stride == 1:
        assert c_out == Cin, "stride=1 residual add requires c_out == c_in"
        Wg = W + 1
        Ldata = H * Wg
        Simg = _round_up(Ldata + 2 * (Wg + 1), 128)     # 128-aligned per image
        Pf = (Simg - Ldata) // 2
        Pb = Simg - Ldata - Pf
        assert Pf >= Wg + 1 and Pb >= Wg + 1
        Lb = B * Simg

        # Guard-column + padded layout, built once in XLA.
        xg = jnp.pad(x, ((0, 0), (0, 0), (0, 0), (0, 1)))          # guard col
        xg = xg.reshape(Npad, Cin, Ldata)
        xg = jnp.pad(xg, ((0, 0), (0, 0), (Pf, Pb)))               # [Np,Cin,Simg]
        vm = np.zeros((1, Simg), np.float32)
        v2d = np.zeros((H, Wg), np.float32); v2d[:, :W] = 1.0
        vm[0, Pf:Pf + Ldata] = v2d.reshape(-1)
        ones_row = jnp.broadcast_to(jnp.asarray(vm), (Npad, 1, Simg))
        xg = jnp.concatenate([xg, ones_row], axis=1)               # [Np,Cin+1,Simg]
        xg = (xg.reshape(G, B, Cin + 1, Simg)
                .transpose(0, 2, 1, 3).reshape(G, Cin + 1, Lb))

        ce = pl.CostEstimate(
            flops=int(G * Lb * midp * (2 * (Cin + 1) + 17 + 2 * c_out)),
            transcendentals=0,
            bytes_accessed=int(4 * G * Lb * (Cin + 1 + c_out)))

        out = pl.pallas_call(
            functools.partial(bottleneck_s1_kernel, W=W, n_lanes=Lb),
            out_shape=jax.ShapeDtypeStruct((G, c_out, Lb), jnp.float32),
            grid=(G,),
            in_specs=[pl.BlockSpec((None, Cin + 1, Lb), lambda g: (g, 0, 0))]
                     + wspecs,
            out_specs=pl.BlockSpec((None, c_out, Lb), lambda g: (g, 0, 0)),
            compiler_params=cparams,
            cost_estimate=ce,
        )(xg, *wargs)

        out = (out.reshape(G, c_out, B, Simg)
                  .transpose(0, 2, 1, 3).reshape(Npad, c_out, Simg))
        out = out[:N, :, Pf:Pf + Ldata].reshape(N, c_out, H, Wg)[..., :W]
        return out

    # ---- stride == 2 ----
    assert H % 2 == 0 and W % 2 == 0, "stride=2 path assumes even H, W"
    Ho, Wo = H // 2, W // 2
    Wog = Wo + 1
    Ldata = Ho * Wog
    Sph = _round_up(Ldata + Wog + 1, 128)               # 128-aligned per phase
    Pf = Sph - Ldata
    Lph = B * Sph
    Ct = c_out + Cin

    # Spatial phase split (ee, eo, oe, oo) + guard cols + padding, once in XLA.
    x6 = x.reshape(Npad, Cin, Ho, 2, Wo, 2)
    ph = jnp.stack([x6[:, :, :, a, :, b] for a in (0, 1) for b in (0, 1)],
                   axis=0)                                         # [4,Np,Cin,Ho,Wo]
    ph = jnp.pad(ph, ((0, 0), (0, 0), (0, 0), (0, 0), (0, 1)))     # guard col
    ph = ph.reshape(4, Npad, Cin, Ldata)
    ph = jnp.pad(ph, ((0, 0), (0, 0), (0, 0), (Pf, 0)))            # [4,Np,Cin,Sph]
    vm = np.zeros((1, Sph), np.float32)
    v2d = np.zeros((Ho, Wog), np.float32); v2d[:, :Wo] = 1.0
    vm[0, Pf:] = v2d.reshape(-1)
    ones_row = jnp.broadcast_to(jnp.asarray(vm), (4, Npad, 1, Sph))
    ph = jnp.concatenate([ph, ones_row], axis=2)                   # [4,Np,Cin+1,Sph]
    ph = (ph.reshape(4, G, B, Cin + 1, Sph)
            .transpose(1, 3, 0, 2, 4).reshape(G, Cin + 1, 4 * Lph))

    ce = pl.CostEstimate(
        flops=int(G * Lph * (8 * (Cin + 1) * midp
                             + 17 * midp + 2 * midp * c_out + 11 * Cin)),
        transcendentals=0,
        bytes_accessed=int(4 * G * Lph * (4 * (Cin + 1) + Ct)))

    out = pl.pallas_call(
        functools.partial(bottleneck_s2_kernel, c_out=c_out, Wo=Wo,
                          phase_lanes=Lph),
        out_shape=jax.ShapeDtypeStruct((G, Ct, Lph), jnp.float32),
        grid=(G,),
        in_specs=[pl.BlockSpec((None, Cin + 1, 4 * Lph), lambda g: (g, 0, 0))]
                 + wspecs,
        out_specs=pl.BlockSpec((None, Ct, Lph), lambda g: (g, 0, 0)),
        compiler_params=cparams,
        cost_estimate=ce,
    )(ph, *wargs)

    out = (out.reshape(G, Ct, B, Sph)
              .transpose(0, 2, 1, 3).reshape(Npad, Ct, Sph))
    out = out[:N, :, Pf:].reshape(N, Ct, Ho, Wog)[..., :Wo]
    return out


# ----------------------------------------------------------------------------
# Parameter construction / folding
# ----------------------------------------------------------------------------
def init_params(key, c_in, c_out, groups):
    g1 = 1 if c_in == 24 else groups
    mid = c_out // 4
    ks = jax.random.split(key, 6)
    w1 = 0.3 * jax.random.normal(ks[0], (mid, c_in // g1, 1, 1), jnp.float32)
    w2 = 0.3 * jax.random.normal(ks[1], (mid, 1, 3, 3), jnp.float32)
    w3 = 0.3 * jax.random.normal(ks[2], (c_out, mid // groups, 1, 1), jnp.float32)

    def bn(k, c):
        k1, k2, k3, k4 = jax.random.split(k, 4)
        gamma = jax.random.uniform(k1, (c,), jnp.float32, 0.8, 1.2)
        beta = 0.1 * jax.random.normal(k2, (c,), jnp.float32)
        mean = 0.1 * jax.random.normal(k3, (c,), jnp.float32)
        var = jax.random.uniform(k4, (c,), jnp.float32, 0.5, 1.5)
        return gamma, beta, mean, var

    return dict(w1=w1, w2=w2, w3=w3,
                bn1=bn(ks[3], mid), bn2=bn(ks[4], mid), bn3=bn(ks[5], c_out),
                g1=g1, mid=mid)


def _fold_bn(gamma, beta, mean, var, eps=1e-5):
    gamma, beta = np.asarray(gamma), np.asarray(beta)
    mean, var = np.asarray(mean), np.asarray(var)
    scale = gamma / np.sqrt(var + eps)
    return scale, beta - mean * scale


def _block_diag_from_grouped(w, groups):
    # w: [c_out, c_in_per_group, 1, 1] -> dense block-diagonal [c_out, c_in]
    c_out, cpg = w.shape[0], w.shape[1]
    opg = c_out // groups
    w2 = np.asarray(w[:, :, 0, 0])
    dense = np.zeros((c_out, cpg * groups), np.float32)
    for gi in range(groups):
        dense[gi * opg:(gi + 1) * opg, gi * cpg:(gi + 1) * cpg] = \
            w2[gi * opg:(gi + 1) * opg]
    return dense


def prepare_kernel_params(params, groups):
    g1, mid = params["g1"], params["mid"]
    w1d = _block_diag_from_grouped(params["w1"], g1)      # [mid, c_in]
    w3d = _block_diag_from_grouped(params["w3"], groups)  # [c_out, mid]
    s1, b1 = _fold_bn(*params["bn1"])
    s2, b2 = _fold_bn(*params["bn2"])
    s3, b3 = _fold_bn(*params["bn3"])
    # Channel shuffle folded into conv1's output rows; BN scales folded into
    # the conv weights; BN1 bias folded as an extra weight column (it rides on
    # the valid-indicator input row so padding lanes stay exactly zero).
    perm = np.arange(mid).reshape(g1, mid // g1).T.reshape(-1)
    w1f = s1[perm][:, None] * w1d[perm]
    w1_aug = np.concatenate([w1f, b1[perm][:, None]], axis=1)   # [mid, c_in+1]
    w2f = s2[:, None] * np.asarray(params["w2"])[:, 0].reshape(mid, 9)
    b2f = b2[:, None]
    w3f = s3[:, None] * w3d
    b3f = b3[:, None]
    # Pad mid up to a sublane multiple (zero rows/cols are exact no-ops).
    midp = _round_up(mid, 8)
    if midp != mid:
        pad = midp - mid
        w1_aug = np.pad(w1_aug, ((0, pad), (0, 0)))
        w2f = np.pad(w2f, ((0, pad), (0, 0)))
        b2f = np.pad(b2f, ((0, pad), (0, 0)))
        w3f = np.pad(w3f, ((0, 0), (0, pad)))
    # MXU operands pre-cast to bf16; VPU-side tensors stay f32.
    return dict(w1=jnp.asarray(w1_aug, jnp.bfloat16),
                w2=jnp.asarray(w2f, jnp.float32),
                b2=jnp.asarray(b2f, jnp.float32),
                w3=jnp.asarray(w3f, jnp.bfloat16),
                b3=jnp.asarray(b3f, jnp.float32))


# ----------------------------------------------------------------------------
# Pure-JAX reference (lax convs) for verification
# ----------------------------------------------------------------------------
def reference_bottleneck(x, params, *, stride, groups):
    g1 = params["g1"]
    eps = 1e-5
    dn = ("NCHW", "OIHW", "NCHW")
    P = jax.lax.Precision.HIGHEST

    def bn_apply(y, b):
        gamma, beta, mean, var = b
        inv = gamma / jnp.sqrt(var + eps)
        return (y - mean[None, :, None, None]) * inv[None, :, None, None] \
            + beta[None, :, None, None]

    out = jax.lax.conv_general_dilated(x, params["w1"], (1, 1), "VALID",
                                       dimension_numbers=dn,
                                       feature_group_count=g1, precision=P)
    out = jax.nn.relu(bn_apply(out, params["bn1"]))
    N, C, H, W = out.shape
    out = out.reshape(N, g1, C // g1, H, W).transpose(0, 2, 1, 3, 4).reshape(N, C, H, W)
    out = jax.lax.conv_general_dilated(out, params["w2"], (stride, stride),
                                       ((1, 1), (1, 1)), dimension_numbers=dn,
                                       feature_group_count=C, precision=P)
    out = jax.nn.relu(bn_apply(out, params["bn2"]))
    out = jax.lax.conv_general_dilated(out, params["w3"], (1, 1), "VALID",
                                       dimension_numbers=dn,
                                       feature_group_count=groups, precision=P)
    out = bn_apply(out, params["bn3"])
    if stride == 2:
        res = jax.lax.reduce_window(x, 0.0, jax.lax.add, (1, 1, 3, 3),
                                    (1, 1, 2, 2),
                                    ((0, 0), (0, 0), (1, 1), (1, 1))) / 9.0
        out = jax.nn.relu(jnp.concatenate([out, res], axis=1))
    else:
        out = jax.nn.relu(out + x)
    return out


# ----------------------------------------------------------------------------
if __name__ == "__main__":
    key = jax.random.PRNGKey(0)
    kx, kp1, kp2 = jax.random.split(key, 3)

    N, Cin, H, W = 2, 16, 16, 16
    x = jax.random.normal(kx, (N, Cin, H, W), jnp.float32)

    # (output_channel, stride, groups, key). stride=1 needs c_out == c_in.
    configs = [(16, 1, 2, kp1), (32, 2, 2, kp2)]
    for c_out, stride, groups, kp in configs:
        params = init_params(kp, Cin, c_out, groups)
        prep = prepare_kernel_params(params, groups)
        fwd = jax.jit(functools.partial(bottleneck_forward,
                                        stride=stride, c_out=c_out))
        out = jax.block_until_ready(fwd(x, prep))
        ref = reference_bottleneck(x, params, stride=stride, groups=groups)
        err = float(jnp.max(jnp.abs(out - ref)))
        # bf16 MXU operands (f32 accumulation) -> scale the tolerance with the
        # output magnitude; a layout/index bug would give O(1) errors.
        tol = 3e-2 * max(1.0, float(jnp.max(jnp.abs(ref))))
        if not (out.shape == ref.shape and err < tol):
            raise SystemExit(
                f"MISMATCH stride={stride}: shape {out.shape} vs {ref.shape}, "
                f"max abs err {err} (tol {tol})")
    print("KERNEL_OK")
</pallas_src>

<mosaic_0001>
module attributes {stable_mosaic.version = 11 : i64} {
  func.func @bottleneck_s1_kernel(%arg0: i32, %arg1: memref<1x17x384xf32, #tpu.memory_space<vmem>>, %arg2: memref<8x17xbf16, #tpu.memory_space<vmem>>, %arg3: memref<8x9xf32, #tpu.memory_space<vmem>>, %arg4: memref<8x1xf32, #tpu.memory_space<vmem>>, %arg5: memref<16x8xbf16, #tpu.memory_space<vmem>>, %arg6: memref<16x1xf32, #tpu.memory_space<vmem>>, %arg7: memref<1x16x384xf32, #tpu.memory_space<vmem>>) attributes {dimension_semantics = [#tpu.dimension_semantics<parallel>], iteration_bounds = array<i64: 2>, scalar_prefetch = 0 : i64, scratch_operands = 0 : i64, tpu.core_type = #tpu.core_type<tc>, window_params = [{transform_indices = @transform_0, window_bounds = array<i64: 1, 17, 384>}, {pipeline_mode = #tpu.pipeline_mode<synchronous>, transform_indices = @transform_1, window_bounds = array<i64: 8, 17>}, {pipeline_mode = #tpu.pipeline_mode<synchronous>, transform_indices = @transform_2, window_bounds = array<i64: 8, 9>}, {pipeline_mode = #tpu.pipeline_mode<synchronous>, transform_indices = @transform_3, window_bounds = array<i64: 8, 1>}, {pipeline_mode = #tpu.pipeline_mode<synchronous>, transform_indices = @transform_4, window_bounds = array<i64: 16, 8>}, {pipeline_mode = #tpu.pipeline_mode<synchronous>, transform_indices = @transform_5, window_bounds = array<i64: 16, 1>}, {transform_indices = @transform_6, window_bounds = array<i64: 1, 16, 384>}]} {
    %c0 = arith.constant 0 : index
    %c0_0 = arith.constant 0 : index
    %c0_1 = arith.constant 0 : index
    %0 = vector.load %arg1[%c0, %c0_0, %c0_1] : memref<1x17x384xf32, #tpu.memory_space<vmem>>, vector<1x17x384xf32>
    %1 = vector.shape_cast %0 : vector<1x17x384xf32> to vector<17x384xf32>
    %c0_2 = arith.constant 0 : index
    %c0_3 = arith.constant 0 : index
    %2 = vector.load %arg2[%c0_2, %c0_3] : memref<8x17xbf16, #tpu.memory_space<vmem>>, vector<8x17xbf16>
    %3 = arith.truncf %1 : vector<17x384xf32> to vector<17x384xbf16>
    %cst = arith.constant dense<0.000000e+00> : vector<8x384xf32>
    %4 = tpu.matmul %2, %3, %cst {dimension_numbers = #tpu.dot_dimension_numbers<[1], [0], [0], [1], [0, 0, 1, 1], [], []>} : vector<8x17xbf16>, vector<17x384xbf16>, vector<8x384xf32> -> vector<8x384xf32>
    %cst_4 = arith.constant 0.000000e+00 : f32
    %5 = vector.broadcast %cst_4 : f32 to vector<8x384xf32>
    %6 = arith.maximumf %4, %5 : vector<8x384xf32>
    %c0_5 = arith.constant 0 : index
    %c0_6 = arith.constant 0 : index
    %7 = vector.load %arg3[%c0_5, %c0_6] : memref<8x9xf32, #tpu.memory_space<vmem>>, vector<8x9xf32>
    %c18_i32 = arith.constant 18 : i32
    %8 = tpu.dynamic_rotate %6 by %c18_i32 dim 1 : vector<8x384xf32>, i32 -> vector<8x384xf32>
    %9 = vector.extract_strided_slice %7 {offsets = [0, 0], sizes = [8, 1], strides = [1, 1]} : vector<8x9xf32> to vector<8x1xf32>
    %10 = vector.broadcast %9 : vector<8x1xf32> to vector<8x384xf32>
    %11 = arith.mulf %10, %8 : vector<8x384xf32>
    %c17_i32 = arith.constant 17 : i32
    %12 = tpu.dynamic_rotate %6 by %c17_i32 dim 1 : vector<8x384xf32>, i32 -> vector<8x384xf32>
    %13 = vector.extract_strided_slice %7 {offsets = [0, 1], sizes = [8, 1], strides = [1, 1]} : vector<8x9xf32> to vector<8x1xf32>
    %14 = vector.broadcast %13 : vector<8x1xf32> to vector<8x384xf32>
    %15 = arith.mulf %14, %12 : vector<8x384xf32>
    %16 = arith.addf %11, %15 : vector<8x384xf32>
    %c16_i32 = arith.constant 16 : i32
    %17 = tpu.dynamic_rotate %6 by %c16_i32 dim 1 : vector<8x384xf32>, i32 -> vector<8x384xf32>
    %18 = vector.extract_strided_slice %7 {offsets = [0, 2], sizes = [8, 1], strides = [1, 1]} : vector<8x9xf32> to vector<8x1xf32>
    %19 = vector.broadcast %18 : vector<8x1xf32> to vector<8x384xf32>
    %20 = arith.mulf %19, %17 : vector<8x384xf32>
    %21 = arith.addf %16, %20 : vector<8x384xf32>
    %c1_i32 = arith.constant 1 : i32
    %22 = tpu.dynamic_rotate %6 by %c1_i32 dim 1 : vector<8x384xf32>, i32 -> vector<8x384xf32>
    %23 = vector.extract_strided_slice %7 {offsets = [0, 3], sizes = [8, 1], strides = [1, 1]} : vector<8x9xf32> to vector<8x1xf32>
    %24 = vector.broadcast %23 : vector<8x1xf32> to vector<8x384xf32>
    %25 = arith.mulf %24, %22 : vector<8x384xf32>
    %26 = arith.addf %21, %25 : vector<8x384xf32>
    %27 = vector.extract_strided_slice %7 {offsets = [0, 4], sizes = [8, 1], strides = [1, 1]} : vector<8x9xf32> to vector<8x1xf32>
    %28 = vector.broadcast %27 : vector<8x1xf32> to vector<8x384xf32>
    %29 = arith.mulf %28, %6 : vector<8x384xf32>
    %30 = arith.addf %26, %29 : vector<8x384xf32>
    %c383_i32 = arith.constant 383 : i32
    %31 = tpu.dynamic_rotate %6 by %c383_i32 dim 1 : vector<8x384xf32>, i32 -> vector<8x384xf32>
    %32 = vector.extract_strided_slice %7 {offsets = [0, 5], sizes = [8, 1], strides = [1, 1]} : vector<8x9xf32> to vector<8x1xf32>
    %33 = vector.broadcast %32 : vector<8x1xf32> to vector<8x384xf32>
    %34 = arith.mulf %33, %31 : vector<8x384xf32>
    %35 = arith.addf %30, %34 : vector<8x384xf32>
    %c368_i32 = arith.constant 368 : i32
    %36 = tpu.dynamic_rotate %6 by %c368_i32 dim 1 : vector<8x384xf32>, i32 -> vector<8x384xf32>
    %37 = vector.extract_strided_slice %7 {offsets = [0, 6], sizes = [8, 1], strides = [1, 1]} : vector<8x9xf32> to vector<8x1xf32>
    %38 = vector.broadcast %37 : vector<8x1xf32> to vector<8x384xf32>
    %39 = arith.mulf %38, %36 : vector<8x384xf32>
    %40 = arith.addf %35, %39 : vector<8x384xf32>
    %c367_i32 = arith.constant 367 : i32
    %41 = tpu.dynamic_rotate %6 by %c367_i32 dim 1 : vector<8x384xf32>, i32 -> vector<8x384xf32>
    %42 = vector.extract_strided_slice %7 {offsets = [0, 7], sizes = [8, 1], strides = [1, 1]} : vector<8x9xf32> to vector<8x1xf32>
    %43 = vector.broadcast %42 : vector<8x1xf32> to vector<8x384xf32>
    %44 = arith.mulf %43, %41 : vector<8x384xf32>
    %45 = arith.addf %40, %44 : vector<8x384xf32>
    %c366_i32 = arith.constant 366 : i32
    %46 = tpu.dynamic_rotate %6 by %c366_i32 dim 1 : vector<8x384xf32>, i32 -> vector<8x384xf32>
    %47 = vector.extract_strided_slice %7 {offsets = [0, 8], sizes = [8, 1], strides = [1, 1]} : vector<8x9xf32> to vector<8x1xf32>
    %48 = vector.broadcast %47 : vector<8x1xf32> to vector<8x384xf32>
    %49 = arith.mulf %48, %46 : vector<8x384xf32>
    %50 = arith.addf %45, %49 : vector<8x384xf32>
    %c0_7 = arith.constant 0 : index
    %c0_8 = arith.constant 0 : index
    %51 = vector.load %arg4[%c0_7, %c0_8] : memref<8x1xf32, #tpu.memory_space<vmem>>, vector<8x1xf32>
    %52 = vector.broadcast %51 : vector<8x1xf32> to vector<8x384xf32>
    %53 = arith.addf %50, %52 : vector<8x384xf32>
    %cst_9 = arith.constant 0.000000e+00 : f32
    %54 = vector.broadcast %cst_9 : f32 to vector<8x384xf32>
    %55 = arith.maximumf %53, %54 : vector<8x384xf32>
    %c0_10 = arith.constant 0 : index
    %c0_11 = arith.constant 0 : index
    %56 = vector.load %arg5[%c0_10, %c0_11] : memref<16x8xbf16, #tpu.memory_space<vmem>>, vector<16x8xbf16>
    %57 = arith.truncf %55 : vector<8x384xf32> to vector<8x384xbf16>
    %cst_12 = arith.constant dense<0.000000e+00> : vector<16x384xf32>
    %58 = tpu.matmul %56, %57, %cst_12 {dimension_numbers = #tpu.dot_dimension_numbers<[1], [0], [0], [1], [0, 0, 1, 1], [], []>} : vector<16x8xbf16>, vector<8x384xbf16>, vector<16x384xf32> -> vector<16x384xf32>
    %c0_13 = arith.constant 0 : index
    %c0_14 = arith.constant 0 : index
    %59 = vector.load %arg6[%c0_13, %c0_14] : memref<16x1xf32, #tpu.memory_space<vmem>>, vector<16x1xf32>
    %60 = vector.broadcast %59 : vector<16x1xf32> to vector<16x384xf32>
    %61 = arith.addf %58, %60 : vector<16x384xf32>
    %62 = vector.extract_strided_slice %1 {offsets = [0, 0], sizes = [16, 384], strides = [1, 1]} : vector<17x384xf32> to vector<16x384xf32>
    %63 = arith.addf %61, %62 : vector<16x384xf32>
    %cst_15 = arith.constant 0.000000e+00 : f32
    %64 = vector.broadcast %cst_15 : f32 to vector<16x384xf32>
    %65 = arith.maximumf %63, %64 : vector<16x384xf32>
    %c0_16 = arith.constant 0 : index
    %c0_17 = arith.constant 0 : index
    %c0_18 = arith.constant 0 : index
    %66 = vector.load %arg7[%c0_16, %c0_17, %c0_18] : memref<1x16x384xf32, #tpu.memory_space<vmem>>, vector<1x16x384xf32>
    %67 = vector.shape_cast %66 : vector<1x16x384xf32> to vector<16x384xf32>
    %68 = vector.shape_cast %65 : vector<16x384xf32> to vector<1x16x384xf32>
    tpu.vector_store %arg7[%c0_16, %c0_17, %c0_18], %68 {strides = array<i32>} : memref<1x16x384xf32, #tpu.memory_space<vmem>>, vector<1x16x384xf32>,
    return
  }
  func.func @transform_0(%arg0: i32) -> (i32, i32, i32) {
    %c0_i32 = arith.constant 0 : i32
    %c0_i32_0 = arith.constant 0 : i32
    %c0_i32_1 = arith.constant 0 : i32
    return %arg0, %c0_i32, %c0_i32_0 : i32, i32, i32
  }
  func.func @transform_1(%arg0: i32) -> (i32, i32) {
    %c0_i32 = arith.constant 0 : i32
    %c0_i32_0 = arith.constant 0 : i32
    %c0_i32_1 = arith.constant 0 : i32
    return %c0_i32, %c0_i32_0 : i32, i32
  }
  func.func @transform_2(%arg0: i32) -> (i32, i32) {
    %c0_i32 = arith.constant 0 : i32
    %c0_i32_0 = arith.constant 0 : i32
    %c0_i32_1 = arith.constant 0 : i32
    return %c0_i32, %c0_i32_0 : i32, i32
  }
  func.func @transform_3(%arg0: i32) -> (i32, i32) {
    %c0_i32 = arith.constant 0 : i32
    %c0_i32_0 = arith.constant 0 : i32
    %c0_i32_1 = arith.constant 0 : i32
    return %c0_i32, %c0_i32_0 : i32, i32
  }
  func.func @transform_4(%arg0: i32) -> (i32, i32) {
    %c0_i32 = arith.constant 0 : i32
    %c0_i32_0 = arith.constant 0 : i32
    %c0_i32_1 = arith.constant 0 : i32
    return %c0_i32, %c0_i32_0 : i32, i32
  }
  func.func @transform_5(%arg0: i32) -> (i32, i32) {
    %c0_i32 = arith.constant 0 : i32
    %c0_i32_0 = arith.constant 0 : i32
    %c0_i32_1 = arith.constant 0 : i32
    return %c0_i32, %c0_i32_0 : i32, i32
  }
  func.func @transform_6(%arg0: i32) -> (i32, i32, i32) {
    %c0_i32 = arith.constant 0 : i32
    %c0_i32_0 = arith.constant 0 : i32
    %c0_i32_1 = arith.constant 0 : i32
    return %arg0, %c0_i32, %c0_i32_0 : i32, i32, i32
  }
}

</mosaic_0001>

<bundles_post_ra>
// kernel: bottleneck_forward.1
= control target key start
LH: loop header
LB: loop body
LE: loop exit
PB: predicated region body
PF: predicated region fallthrough
CT: control target
= control target key end

     0   :  { %s881_s21 = smov 0   ;;  %s1081_s0 = inlined_call_operand.vmem [shape: f32[2,17,384], index: 0, kind: input, shape index: {}]   ;;  %s1082_s1 = inlined_call_operand.vmem [shape: bf16[8,17], index: 1, kind: input, shape index: {}]   ;;  %s1083_s2 = inlined_call_operand.vmem [shape: f32[8,9], index: 2, kind: input, shape index: {}]   ;;  %s1084_s3 = inlined_call_operand.vmem [shape: f32[8,1], index: 3, kind: input, shape index: {}]   ;;  %s1085_s4 = inlined_call_operand.vmem [shape: bf16[16,8], index: 4, kind: input, shape index: {}]   ;;  %s1086_s5 = inlined_call_operand.vmem [shape: f32[16,1], index: 5, kind: input, shape index: {}]   ;;  %s1087_s6 = inlined_call_operand.vmem [shape: f32[2,16,384], index: 6, kind: output, shape index: {}]  }
   0x1 LB: > { %s745_s22 = sadd.s32 4294967295, %s825_s21   ;;  %p749_p0 = scmp.ge.s32.totalorder %s825_s21, 1  ;;  %s825_s21 = sphi %s881_s21, %s16_s21  }
   0x2   : > { %p212_p1 = scmp.lt.s32.totalorder %s825_s21, 3 }
   0x4   : > { %p213_p2 = pnand %p749_p0, %p212_p1 }
   0x5   : > { %p242_p3 = scmp.lt.s32.totalorder (!%p213_p2), %s745_s22, 1  ;;  %v892_v0 = vld [vmem:[%s1083_s2] sm:$0xff] (!%p213_p2)  ;;  %v827_v1 = vmov (!%p213_p2), 0.0   ;;  %vm828_vm0 = vmmov (!%p213_p2), 0   ;;  %v829_v2 = vmov (!%p213_p2), 0   ;;  %v830_v3 = vmov (!%p213_p2), 2  }
   0x6   : > { %216 = sbr.rel (%p213_p2) target bundleno = 654 (0x28e), region = 44  ;;  %765 = vmatprep.subr.bf16.mxu1 (!%p213_p2), %v827_v1  ;;  %769 = vmatprep.mubr.msk.bf16.mxu1 (!%p213_p2), %vm828_vm0, %v827_v1  ;;  %v831_v4 = vmov (!%p213_p2), 1   ;;  %vm273_vm1 = vcmask (!%p213_p2), 1040384   ;;  %v832_v8 = vmov (!%p213_p2), 3   ;;  %v833_v14 = vmov (!%p213_p2), 7   ;;  %s838_s7 = smov (!%p213_p2), 17  }
   0x7   : > { %317 = vmatprep.mubr.bf16.mxu0 (!%p213_p2), %v829_v2  ;;  %809 = vset.pattern.permute.xlu1 (!%p213_p2), %v830_v3  ;;  %v275_v13 = vsel (!%p213_p2), %vm273_vm1, 65535, %v829_v2  ;;  %v834_v26 = vmov (!%p213_p2), 4   ;;  %v262_v27 = vld [vmem:[%s1082_s1] sm:$0xf] (!%p213_p2)  ;;  %vm269_vm2 = vcmask (!%p213_p2), 138240   ;;  %v835_v28 = vmov (!%p213_p2), 5  }
   0x8   : > { %421 = vperm.xlu1 (!%p213_p2), %809, %v892_v0   ;;  %808 = vset.pattern.permute.xlu0 (!%p213_p2), %v831_v4  ;;  %v836_v29 = vmov (!%p213_p2), 6   ;;  %v837_v30 = vmov (!%p213_p2), 8   ;;  %s839_s8 = smov (!%p213_p2), 18   ;;  %s840_s9 = smov (!%p213_p2), 16   ;;  %v540_v42 = vld [vmem:[%s1084_s3] sm:$0xff] (!%p213_p2)  ;;  %v558_v43 = vld [vmem:[%s1086_s5 + $0x8] sm:$0xff] (!%p213_p2) }
   0x9   : > { %401 = vperm.xlu0 (!%p213_p2), %808, %v892_v0   ;;  %s841_s10 = smov (!%p213_p2), 1   ;;  %s842_s11 = smov (!%p213_p2), 127   ;;  %v557_v44 = vld [vmem:[%s1086_s5] sm:$0xff] (!%p213_p2)  ;;  %vm578_vm11 = vcmask (!%p213_p2), 1043456   ;;  %vm574_vm12 = vcmask (!%p213_p2), 64512  }
   0xa   : > { %s843_s12 = smov (!%p213_p2), 111   ;;  %s844_s13 = smov (!%p213_p2), 110  }
   0xb   : > { %s845_s14 = smov (!%p213_p2), 112  }
   0xc   : > { %810 = vset.pattern.permute.xlu1 (!%p213_p2), %v832_v8 }
   0xd   : > { %s1089_s22 = smov (!%p242_p3, %s745_s22), 1  ;;  %441 = vperm.xlu1 %810, %v892_v0   ;;  %814 = vset.pattern.permute.xlu0 %v833_v14 }
   0xe   : > { %s779_s25 = smul.u32 72, %s1089_s22  ;;  %511 = vperm.xlu0 %814, %v892_v0  }
  0x10   : > { %s246_s28 = scalar_lea.vmem %s1081_s0, %s779_s25  ;;  %s780_s25 = smul.u32 48, %s1089_s22 }
  0x11   : > { %v904_v5 = vld [vmem:[%s246_s28 + $0x10] sm:$0xff]  ;;  %v906_v6 = vld [vmem:[%s246_s28 + $0x28] sm:$0xff]  ;;  %v912_v10 = vld [vmem:[%s246_s28 + $0x20] sm:$0xff]  ;;  %811 = vset.pattern.permute.xlu1 %v834_v26 }
  0x12   : > { %v908_v7 = vld [vmem:[%s246_s28 + $0x8] sm:$0xff]  ;;  %v265_v9 = vpack.c.bf16 %v906_v6, %v904_v5  ;;  %v914_v11 = vld [vmem:[%s246_s28] sm:$0xff]  ;;  %v916_v12 = vld [vmem:[%s246_s28 + $0x18] sm:$0xff]  ;;  %451 = vperm.xlu1 %811, %v892_v0   ;;  %815 = vset.pattern.permute.xlu0 %v829_v2 }
  0x13   : > { %v264_v15 = vpack.c.bf16 %v912_v10, %v908_v7  ;;  %v263_v16 = vpack.c.bf16 %v916_v12, %v914_v11  ;;  %v261_v17 = vld [vmem:[%s246_s28 + $0x40] sm:$0x1]  ;;  %v260_v18 = vld [vmem:[%s246_s28 + $0x38] sm:$0x1]  ;;  %v259_v19 = vld [vmem:[%s246_s28 + $0x30] sm:$0x1]  ;;  %384 = vperm.xlu0 %815, %v892_v0   ;;  %s251_s28 = scalar_lea.vmem %s1087_s6, %s780_s25 }
  0x14   : > { %766 = vmatpush3.bf16.msra.mxu1 %v265_v9  ;;  %v268_v20 = vpack.c.bf16 %v261_v17, %v261_v17  ;;  %v267_v21 = vpack.c.bf16 %v260_v18, %v260_v18  ;;  %v266_v22 = vpack.c.bf16 %v259_v19, %v259_v19 }
  0x15   : > { %285 = vmatprep.subr.bf16.mxu0 %v264_v15  ;;  %767 = vmatprep.subr.bf16.mxu1 %v827_v1 }
  0x16   : > { %286 = vmatpush1.bf16.msra.mxu0 %v263_v16  ;;  %v283_v23 = vand.u32 %v275_v13, %v268_v20  ;;  %v280_v24 = vand.u32 %v275_v13, %v267_v21  ;;  %v277_v25 = vand.u32 %v275_v13, %v266_v22  ;;  %812 = vset.pattern.permute.xlu1 %v835_v28 }
  0x17   : > { %471 = vperm.xlu1 %812, %v892_v0  }
  0x18   : > { %768 = vmatpush3.bf16.msra.mxu1 %v283_v23  ;;  %287 = vmatprep.subr.bf16.mxu0 %v280_v24 }
  0x19   : > { %773 = vmatprep.subr.bf16.mxu1 %v827_v1 }
  0x1a   : > { %288 = vmatpush1.bf16.msra.mxu0 %v277_v25 }
  0x1b   : > { %770 = vmatmul.mubr.msk.bf16.vlgmr.msra.gmra.mrb[0].mxu1 %vm269_vm2, %v262_v27  ;;  %813 = vset.pattern.permute.xlu1 %v836_v29 }
  0x1c   : > { %775 = vmatprep.mubr.msk.bf16.mxu1 %vm828_vm0, %v827_v1  ;;  %491 = vperm.xlu1 %813, %v892_v0  }
  0x1d   : > { %752 = vmatmul.mubr.msk.bf16.vlgmr.msra.gmra.mrb[0].mxu0 %vm269_vm2, %v262_v27 }
  0x1e   : > { %620 = vmatprep.mubr.bf16.mxu0 %v829_v2 }
  0x20   : > { %816 = vset.pattern.permute.xlu1 %v837_v30 }
  0x21   : > { %531 = vperm.xlu1 %816, %v892_v0  }
  0x25   : > { %817 = vset.pattern.permute.xlu1 %v829_v2  ;;  %v376_v2 = vlaneseq }
  0x27   : > { %v996_v8 = vand.u32 127, %v376_v2 }
  0x29   : > { %vm378_vm3 = vcmp.lt.s32.totalorder %v996_v8, 18  ;;  %vm396_vm4 = vcmp.lt.s32.totalorder %v996_v8, 17  ;;  %vm416_vm5 = vcmp.lt.s32.totalorder %v996_v8, 16  ;;  %vm436_vm6 = vcmp.lt.s32.totalorder %v996_v8, 1 }
  0x2a   : > { %vm466_vm7 = vcmp.lt.s32.totalorder %v996_v8, 127  ;;  %vm486_vm8 = vcmp.lt.s32.totalorder %v996_v8, 112  ;;  %vm506_vm9 = vcmp.lt.s32.totalorder %v996_v8, 111  ;;  %vm526_vm10 = vcmp.lt.s32.totalorder %v996_v8, 110 }
  0x87   : > { %v422_v45 = vpop.permute.xlu1 %421 }
  0x88   : > { %v402_v49 = vpop.permute.xlu0 %401 }
  0x8c   : > { %v976_v46 = vpop.permute.xlu1 %441 }
  0x8d   : > { %v984_v51 = vpop.permute.xlu0 %511 }
  0x91   : > { %v978_v47 = vpop.permute.xlu1 %451 }
  0x92   : > { %v385_v53 = vpop.permute.xlu0 %384 }
  0x96   : > { %v980_v48 = vpop.permute.xlu1 %471 }
  0x9b   : > { %v982_v50 = vpop.permute.xlu1 %491 }
  0xa0   : > { %v986_v52 = vpop.permute.xlu1 %531 }
  0xee   : > { %v360_v31 = vpop.f32.mrb[0].mxu1 }
  0xef   : > { %v937_v32 = vmax.f32 %v360_v31, 0.0  ;;  %v771_v33 = vpop.f32.mrb[1].mxu1 }
  0xf0   : > { %v363_v34 = vpop.f32.mrb[2].mxu1  ;;  %v319_v35 = vpop.f32.mrb[0].mxu0 }
  0xf1   : > { %394 = vrot.lane.b32.xlu0 %v937_v32, %s838_s7  ;;  %374 = vrot.lane.b32.xlu1 %v937_v32, %s839_s8  ;;  %v772_v36 = vpop.f32.mrb[3].mxu1  ;;  %v941_v37 = vmax.f32 %v319_v35, 0.0  ;;  %v321_v38 = vpop.f32.mrb[1].mxu0 }
  0xf2   : > { %v323_v39 = vpop.f32.mrb[2].mxu0  ;;  %v953_v41 = vmax.f32 %v321_v38, 0.0 }
  0xf3   : > { %v324_v40 = vpop.f32.mrb[3].mxu0 }
  0xf5   : > { %414 = vrot.lane.b32.xlu0 %v937_v32, %s840_s9  ;;  %370 = vrot.lane.b32.xlu1 %v941_v37, %s839_s8 }
  0xf9   : > { %434 = vrot.lane.b32.xlu0 %v937_v32, %s841_s10  ;;  %460 = vrot.lane.b32.xlu1 %v941_v37, %s842_s11 }
  0xfd   : > { %464 = vrot.lane.b32.xlu0 %v937_v32, %s842_s11  ;;  %500 = vrot.lane.b32.xlu1 %v941_v37, %s843_s12 }
 0x101   : > { %390 = vrot.lane.b32.xlu0 %v941_v37, %s838_s7  ;;  %504 = vrot.lane.b32.xlu1 %v937_v32, %s843_s12 }
 0x105   : > { %410 = vrot.lane.b32.xlu0 %v941_v37, %s840_s9  ;;  %520 = vrot.lane.b32.xlu1 %v941_v37, %s844_s13 }
 0x109   : > { %430 = vrot.lane.b32.xlu0 %v941_v37, %s841_s10  ;;  %392 = vrot.lane.b32.xlu1 %v953_v41, %s838_s7 }
 0x10d   : > { %480 = vrot.lane.b32.xlu0 %v941_v37, %s845_s14  ;;  %412 = vrot.lane.b32.xlu1 %v953_v41, %s840_s9 }
 0x111   : > { %432 = vrot.lane.b32.xlu1 %v953_v41, %s841_s10  ;;  %372 = vrot.lane.b32.xlu0 %v953_v41, %s839_s8 }
 0x115   : > { %462 = vrot.lane.b32.xlu1 %v953_v41, %s842_s11  ;;  %484 = vrot.lane.b32.xlu0 %v937_v32, %s845_s14 }
 0x119   : > { %482 = vrot.lane.b32.xlu1 %v953_v41, %s845_s14  ;;  %543 = vperm.xlu0 %815, %v540_v42  }
 0x11d   : > { %522 = vrot.lane.b32.xlu1 %v953_v41, %s844_s13  ;;  %502 = vrot.lane.b32.xlu0 %v953_v41, %s843_s12 }
 0x121   : > { %524 = vrot.lane.b32.xlu0 %v937_v32, %s844_s13  ;;  %561 = vperm.xlu1 %817, %v557_v44  }
 0x125   : > { %566 = vperm.xlu0 %815, %v558_v43  }
 0x163   : > { %v395_v54 = vpop.permute.xlu0 %394  ;;  %v375_v55 = vpop.permute.xlu1 %374 }
 0x167   : > { %v415_v56 = vpop.permute.xlu0 %414  ;;  %v371_v57 = vpop.permute.xlu1 %370 }
 0x168   : > { %v381_v31 = vsel %vm378_vm3, %v375_v55, %v371_v57 }
 0x169   : > { %v387_v43 = vmul.f32 %v385_v53, %v381_v31 }
 0x16b   : > { %v435_v58 = vpop.permute.xlu0 %434  ;;  %v461_v59 = vpop.permute.xlu1 %460 }
 0x16f   : > { %v988_v60 = vpop.permute.xlu0 %464  ;;  %v990_v61 = vpop.permute.xlu1 %500 }
 0x173   : > { %v391_v62 = vpop.permute.xlu0 %390  ;;  %v992_v63 = vpop.permute.xlu1 %504 }
 0x174   : > { %v399_v26 = vsel %vm396_vm4, %v395_v54, %v391_v62 }
 0x175   : > { %v404_v35 = vmul.f32 %v402_v49, %v399_v26 }
 0x177   : > { %v411_v0 = vpop.permute.xlu0 %410  ;;  %v994_v1 = vpop.permute.xlu1 %520  ;;  %v407_v2 = vadd.f32 %v404_v35, %v387_v43 }
 0x178   : > { %v419_v33 = vsel %vm416_vm5, %v415_v56, %v411_v0 }
 0x179   : > { %v424_v44 = vmul.f32 %v422_v45, %v419_v33 }
 0x17b   : > { %v431_v3 = vpop.permute.xlu0 %430  ;;  %v393_v4 = vpop.permute.xlu1 %392 }
 0x17c   : > { %v397_v15 = vsel %vm396_vm4, %v393_v4, %v395_v54  ;;  %v398_v19 = vsel %vm396_vm4, %v391_v62, %v393_v4  ;;  %v439_v39 = vsel %vm436_vm6, %v435_v58, %v431_v3 }
 0x17d   : > { %v406_v20 = vmul.f32 %v402_v49, %v397_v15  ;;  %v405_v25 = vmul.f32 %v402_v49, %v398_v19  ;;  %v444_v4 = vmul.f32 %v976_v46, %v439_v39  ;;  %v456_v49 = vmul.f32 %v978_v47, %v937_v32 }
 0x17f   : > { %v481_v9 = vpop.permute.xlu0 %480  ;;  %v413_v13 = vpop.permute.xlu1 %412 }
 0x180   : > { %v417_v21 = vsel %vm416_vm5, %v413_v13, %v415_v56  ;;  %v418_v27 = vsel %vm416_vm5, %v411_v0, %v413_v13  ;;  %v469_v56 = vsel %vm466_vm7, %v988_v60, %v461_v59 }
 0x181   : > { %v426_v28 = vmul.f32 %v422_v45, %v417_v21  ;;  %v425_v36 = vmul.f32 %v422_v45, %v418_v27  ;;  %v476_v32 = vmul.f32 %v980_v48, %v469_v56 }
 0x183   : > { %v373_v14 = vpop.permute.xlu0 %372  ;;  %v433_v22 = vpop.permute.xlu1 %432 }
 0x184   : > { %v379_v16 = vsel %vm378_vm3, %v373_v14, %v375_v55  ;;  %v380_v17 = vsel %vm378_vm3, %v371_v57, %v373_v14  ;;  %v437_v29 = vsel %vm436_vm6, %v433_v22, %v435_v58  ;;  %v438_v40 = vsel %vm436_vm6, %v431_v3, %v433_v22 }
 0x185   : > { %v389_v18 = vmul.f32 %v385_v53, %v379_v16  ;;  %v388_v23 = vmul.f32 %v385_v53, %v380_v17  ;;  %v446_v42 = vmul.f32 %v976_v46, %v437_v29  ;;  %v445_v55 = vmul.f32 %v976_v46, %v438_v40 }
 0x186   : > { %v427_v57 = vadd.f32 %v424_v44, %v407_v2  ;;  %v455_v46 = vmul.f32 %v978_v47, %v953_v41  ;;  %v454_v16 = vmul.f32 %v978_v47, %v941_v37 }
 0x187   : > { %v409_v24 = vadd.f32 %v406_v20, %v389_v18  ;;  %v408_v30 = vadd.f32 %v405_v25, %v388_v23  ;;  %v463_v38 = vpop.permute.xlu1 %462  ;;  %v485_v53 = vpop.permute.xlu0 %484 }
 0x188   : > { %v468_v0 = vsel %vm466_vm7, %v461_v59, %v463_v38  ;;  %v447_v13 = vadd.f32 %v444_v4, %v427_v57  ;;  %v467_v14 = vsel %vm466_vm7, %v463_v38, %v988_v60  ;;  %v489_v18 = vsel %vm486_vm8, %v485_v53, %v481_v9 }
 0x189   : > { %v429_v34 = vadd.f32 %v426_v28, %v409_v24  ;;  %v428_v54 = vadd.f32 %v425_v36, %v408_v30  ;;  %v474_v17 = vmul.f32 %v980_v48, %v468_v0  ;;  %v475_v21 = vmul.f32 %v980_v48, %v467_v14 }
 0x18a   : > { %v457_v20 = vadd.f32 %v454_v16, %v447_v13  ;;  %v496_v37 = vmul.f32 %v982_v50, %v489_v18 }
 0x18b   : > { %v449_v62 = vadd.f32 %v446_v42, %v429_v34  ;;  %v448_v58 = vadd.f32 %v445_v55, %v428_v54  ;;  %v483_v45 = vpop.permute.xlu1 %482 }
 0x18c   : > { %v488_v15 = vsel %vm486_vm8, %v481_v9, %v483_v45  ;;  %v487_v47 = vsel %vm486_vm8, %v483_v45, %v485_v53  ;;  %v509_v9 = vsel %vm506_vm9, %v992_v63, %v990_v61  ;;  %v477_v23 = vadd.f32 %v474_v17, %v457_v20 }
 0x18d   : > { %v459_v3 = vadd.f32 %v456_v49, %v449_v62  ;;  %v458_v59 = vadd.f32 %v455_v46, %v448_v58  ;;  %v494_v60 = vmul.f32 %v982_v50, %v488_v15  ;;  %v495_v29 = vmul.f32 %v982_v50, %v487_v47 }
 0x18e   : > { %v516_v34 = vmul.f32 %v984_v51, %v509_v9 }
 0x18f   : > { %v479_v41 = vadd.f32 %v476_v32, %v459_v3  ;;  %v523_v22 = vpop.permute.xlu1 %522  ;;  %v478_v24 = vadd.f32 %v475_v21, %v458_v59  ;;  %v497_v30 = vadd.f32 %v494_v60, %v477_v23 }
 0x190   : > { %v528_v48 = vsel %vm526_vm10, %v994_v1, %v523_v22 }
 0x191   : > { %v499_v26 = vadd.f32 %v496_v37, %v479_v41  ;;  %v498_v35 = vadd.f32 %v495_v29, %v478_v24  ;;  %v534_v36 = vmul.f32 %v986_v52, %v528_v48 }
 0x193   : > { %v519_v40 = vadd.f32 %v516_v34, %v499_v26 }
 0x198   : > { %v544_v19 = vpop.permute.xlu0 %543 }
 0x19c   : > { %v503_v25 = vpop.permute.xlu0 %502 }
 0x19d   : > { %v507_v27 = vsel %vm506_vm9, %v503_v25, %v992_v63  ;;  %v508_v28 = vsel %vm506_vm9, %v990_v61, %v503_v25 }
 0x19e   : > { %v514_v31 = vmul.f32 %v984_v51, %v508_v28  ;;  %v515_v33 = vmul.f32 %v984_v51, %v507_v27 }
 0x1a0   : > { %v517_v38 = vadd.f32 %v514_v31, %v497_v30  ;;  %v525_v39 = vpop.permute.xlu0 %524  ;;  %v518_v61 = vadd.f32 %v515_v33, %v498_v35  ;;  %v562_v45 = vpop.permute.xlu1 %561 }
 0x1a1   : > { %v527_v63 = vsel %vm526_vm10, %v523_v22, %v525_v39  ;;  %v529_v50 = vsel %vm526_vm10, %v525_v39, %v994_v1 }
 0x1a2   : > { %v537_v42 = vadd.f32 %v534_v36, %v517_v38  ;;  %v535_v43 = vmul.f32 %v986_v52, %v527_v63  ;;  %v536_v44 = vmul.f32 %v986_v52, %v529_v50  ;;  %v818_v52 = vld [vmem:[%s1085_s4] sm:$0xff]  }
 0x1a4   : > { %v538_v51 = vadd.f32 %v535_v43, %v518_v61  ;;  %v539_v54 = vadd.f32 %v536_v44, %v519_v40  ;;  %v546_v62 = vadd.f32 %v544_v19, %v537_v42  ;;  %v567_v0 = vpop.permute.xlu0 %566 }
 0x1a6   : > { %v547_v2 = vadd.f32 %v544_v19, %v538_v51  ;;  %v549_v4 = vmax.f32 %v546_v62, 0.0  ;;  %v548_v55 = vadd.f32 %v544_v19, %v539_v54 }
 0x1a8   : > { %v550_v49 = vmax.f32 %v547_v2, 0.0  ;;  %v554_v56 = vpack.c.bf16 %v549_v4, %v549_v4  ;;  %v551_v57 = vmax.f32 %v548_v55, 0.0 }
 0x1aa   : > { %v555_v58 = vpack.c.bf16 %v550_v49, %v550_v49  ;;  %v556_v8 = vpack.c.bf16 %v551_v57, %v551_v57  ;;  %v580_v1 = vsel %vm578_vm11, %v554_v56, 0 }
 0x1ac   : > { %755 = vmatprep.subr.msk.bf16.mxu0 %vm578_vm11, %v555_v58  ;;  %v586_v53 = vsel %vm578_vm11, %v556_v8, 0 }
 0x1ad   : > { %589 = vmatpush1.bf16.msra.mxu0 %v580_v1  ;;  %774 = vmatpush3.bf16.msra.mxu1 %v586_v53 }
 0x1b0   : > { %756 = vmatmul.mubr.msk.bf16.vlgmr.msra.gmra.mrb[4].mxu0 %vm574_vm12, %v818_v52  ;;  %776 = vmatmul.mubr.msk.bf16.vlgmr.msra.gmra.mrb[4].mxu1 %vm574_vm12, %v818_v52 }
 0x283   : > { %v622_v3 = vpop.f32.mrb[4].mxu0  ;;  %v665_v13 = vpop.f32.mrb[4].mxu1 }
 0x284   : > { %v624_v46 = vpop.f32.mrb[5].mxu0  ;;  %v777_v32 = vpop.f32.mrb[5].mxu1  ;;  %v623_v14 = vadd.f32 %v622_v3, %v562_v45  ;;  %v666_v15 = vadd.f32 %v665_v13, %v562_v45 }
 0x285   : > { %v626_v16 = vpop.f32.mrb[6].mxu0  ;;  %v668_v59 = vpop.f32.mrb[6].mxu1  ;;  %v625_v17 = vadd.f32 %v624_v46, %v562_v45 }
 0x286   : > { %v627_v18 = vadd.f32 %v626_v16, %v567_v0  ;;  %v669_v19 = vadd.f32 %v668_v59, %v567_v0  ;;  %v628_v41 = vpop.f32.mrb[7].mxu0  ;;  %v672_v20 = vadd.f32 %v623_v14, %v914_v11  ;;  %v674_v21 = vadd.f32 %v666_v15, %v904_v5  ;;  %v778_v60 = vpop.f32.mrb[7].mxu1 }
 0x287   : > { %v629_v22 = vadd.f32 %v628_v41, %v567_v0  ;;  %v673_v37 = vadd.f32 %v625_v17, %v908_v7 }
 0x288   : > { %v675_v47 = vadd.f32 %v627_v18, %v916_v12  ;;  %v677_v9 = vadd.f32 %v669_v19, %v906_v6  ;;  %v678_v23 = vmax.f32 %v672_v20, 0.0  ;;  %v680_v24 = vmax.f32 %v674_v21, 0.0 }
 0x289   : > { %v676_v25 = vadd.f32 %v629_v22, %v912_v10  ;;  %v679_v26 = vmax.f32 %v673_v37, 0.0 }
 0x28a   : > { %v681_v11 = vmax.f32 %v675_v47, 0.0  ;;  %v683_v48 = vmax.f32 %v677_v9, 0.0  ;;  %684 = vst [vmem:[%s251_s28] sm:$0xff] %v678_v23  ;;  %686 = vst [vmem:[%s251_s28 + $0x10] sm:$0xff] %v680_v24 }
 0x28b   : > { %v682_v5 = vmax.f32 %v676_v25, 0.0  ;;  %685 = vst [vmem:[%s251_s28 + $0x8] sm:$0xff] %v679_v26 }
 0x28c   : > { %687 = vst [vmem:[%s251_s28 + $0x18] sm:$0xff] %v681_v11  ;;  %689 = vst [vmem:[%s251_s28 + $0x28] sm:$0xff] %v683_v48 }
 0x28d   : > { %688 = vst [vmem:[%s251_s28 + $0x20] sm:$0xff] %v682_v5 }
 0x28e PF: > { %s16_s21 = sadd.s32 1, %s825_s21  }
 0x28f   : > { %p13_p4 = scmp.ge.s32.totalorder %s16_s21, 4  }
 0x291   :  { %15 = sbr.rel (!%p13_p4) target bundleno = 1 (0x1), region = 74 }

</bundles_post_ra>
